<compile_context>
chip_gen: v6e
topology: v6e:2x2x1
jax: 0.10.0
libtpu: 0.0.40
codegen_flags: <defaults>
</compile_context>

<pallas_src>
import functools
import math

import jax
import jax.numpy as jnp
from jax import lax
from jax.experimental import pallas as pl
from jax.experimental.pallas import tpu as pltpu


def sinusoidal_pe(seq_len: int, d_model: int) -> jnp.ndarray:
    """Plain-JAX PE buffer, identical to the torch __init__ (reference/fallback)."""
    pos = jnp.arange(seq_len, dtype=jnp.float32)[:, None]                  # (T, 1)
    div_term = jnp.exp(
        jnp.arange(0, d_model, 2, dtype=jnp.float32)
        * (-math.log(10000.0) / d_model)
    )                                                                      # (D/2,)
    ang = pos * div_term                                                   # (T, D/2)
    pe = jnp.zeros((seq_len, d_model), dtype=jnp.float32)
    pe = pe.at[:, 0::2].set(jnp.sin(ang))
    pe = pe.at[:, 1::2].set(jnp.cos(ang))
    return pe                                                              # (T, D)


def _pe_add_kernel(x_ref, o_ref, *, tt: int, td: int, d_model: int):
    """x_ref/o_ref: (1, tt, td) tile. PE is generated in-kernel (no HBM stream)."""
    ti = pl.program_id(1)  # tile index along T
    di = pl.program_id(2)  # tile index along D

    # --- Column quantities hoisted to one (1, td) row: exp + int ops touch
    # --- td elements instead of tt*td.
    col = di * td + lax.broadcasted_iota(jnp.int32, (1, td), 1)            # (1, td)
    par_i = col & 1                                                        # 0 = sin col, 1 = cos col
    freq_idx = (col - par_i).astype(jnp.float32)                           # 2*(col//2) -> torch div_term idx
    inv_freq = jnp.exp(freq_idx * jnp.float32(-math.log(10000.0) / d_model))
    phase = par_i.astype(jnp.float32) * jnp.float32(math.pi / 2.0)         # cos(x) = sin(x + pi/2)

    # --- Row positions on a (tt, 1) column.
    row = (ti * tt + lax.broadcasted_iota(jnp.int32, (tt, 1), 0)).astype(jnp.float32)

    # Broadcast to (tt, td): one mul, one add, ONE trig per element.
    ang = row * inv_freq + phase
    pe = jnp.sin(ang)

    o_ref[0] = (x_ref[0].astype(jnp.float32) + pe).astype(o_ref.dtype)


def position_encoder(x: jnp.ndarray, d_model: int | None = None,
                     *, use_pallas: bool | None = None,
                     tile_bytes: int = 4 * 1024 * 1024) -> jnp.ndarray:
    """x: (B, T, D). Returns x + PE[:T], matching the torch module's forward."""
    b, t, d = x.shape
    if d_model is None:
        d_model = d
    if d_model != d:
        # The torch module would shape-error in forward; don't silently produce
        # a PE the reference could never have produced.
        raise ValueError(f"d_model ({d_model}) must equal x's last dim ({d}).")

    if use_pallas is None:
        # Below ~1 MiB the fixed pallas_call overhead dominates; let XLA fuse it.
        use_pallas = x.size >= (1 << 18)
    if not use_pallas:
        pe = sinusoidal_pe(t, d_model)
        return (x.astype(jnp.float32) + pe[None]).astype(x.dtype)

    itemsize = jnp.dtype(x.dtype).itemsize
    sub = {4: 8, 2: 16, 1: 32}.get(itemsize, 8)      # packed sublane multiple per dtype
    budget_elems = max(tile_bytes // itemsize, sub * 128)

    # Lane (last) dim first: lane-dense, whole contiguous rows per DMA.
    if d % 128 == 0:
        td = min(d, max(128, (budget_elems // sub) // 128 * 128))
    else:
        # Non-128-multiple D: take the full dim (BlockSpec rule). Lane-masked
        # stores are cheaper than a wrapper pad + slice (two extra HBM passes).
        td = d

    # Sublane dim: fill the remaining budget, dtype-packed multiple (or full T).
    tt_cap = max(sub, (budget_elems // td) // sub * sub)
    tt = t if t <= tt_cap else tt_cap                 # full dim, or sub-aligned tile

    grid = (b, pl.cdiv(t, tt), pl.cdiv(d, td))        # ragged edges handled by Pallas
    kernel = functools.partial(_pe_add_kernel, tt=tt, td=td, d_model=d_model)

    return pl.pallas_call(
        kernel,
        out_shape=jax.ShapeDtypeStruct((b, t, d), x.dtype),
        grid_spec=pltpu.PrefetchScalarGridSpec(
            num_scalar_prefetch=0,
            grid=grid,
            in_specs=[pl.BlockSpec((1, tt, td), lambda bi, ti, di: (bi, ti, di))],
            out_specs=pl.BlockSpec((1, tt, td), lambda bi, ti, di: (bi, ti, di)),
        ),
        compiler_params=pltpu.CompilerParams(
            dimension_semantics=("parallel", "parallel", "parallel"),
            vmem_limit_bytes=32 * 1024 * 1024,
        ),
        # NOTE: no input_output_aliases — without donation at the jit boundary
        # XLA would insert a defensive full copy of x (an extra HBM pass).
    )(x)


if __name__ == "__main__":
    key = jax.random.PRNGKey(0)

    # --- Small demo shape consistent with the module: x(b, t, c*n) ----------
    B, T, D = 2, 8, 32
    x = jax.random.normal(key, (B, T, D), dtype=jnp.float32)
    ref = x + sinusoidal_pe(T, D)[None]

    out_fallback = position_encoder(x)                 # auto path -> plain JAX at this size
    assert jnp.allclose(out_fallback, ref, atol=1e-5, rtol=1e-5)

    out = jax.block_until_ready(position_encoder(x, use_pallas=True))
    assert out.shape == (B, T, D)
    assert jnp.allclose(out, ref, atol=1e-4, rtol=1e-4)

    # --- Aligned multi-tile grid (lane-dense ~4 MiB tiles) -------------------
    B2, T2, D2 = 2, 2048, 1024
    x2 = jax.random.normal(jax.random.PRNGKey(1), (B2, T2, D2), dtype=jnp.float32)
    ref2 = x2 + sinusoidal_pe(T2, D2)[None]
    out2 = jax.block_until_ready(position_encoder(x2, use_pallas=True))
    assert out2.shape == (B2, T2, D2)
    # Looser tolerance: in-kernel exp/sin vs XLA differ by a few ulps and large
    # positions amplify the angle rounding.
    assert jnp.allclose(out2, ref2, atol=2e-3, rtol=1e-3)

    # --- Unaligned T: ragged last tile, no wrapper pad/slice pass ------------
    B3, T3, D3 = 2, 3000, 1024
    x3 = jax.random.normal(jax.random.PRNGKey(2), (B3, T3, D3), dtype=jnp.float32)
    ref3 = x3 + sinusoidal_pe(T3, D3)[None]
    out3 = jax.block_until_ready(position_encoder(x3, use_pallas=True))
    assert out3.shape == (B3, T3, D3)
    assert jnp.allclose(out3, ref3, atol=3e-3, rtol=1e-3)

    print("KERNEL_OK")
</pallas_src>

<mosaic_0001>
module attributes {stable_mosaic.version = 11 : i64} {
  func.func @_pe_add_kernel(%arg0: i32, %arg1: i32, %arg2: i32, %arg3: memref<1x8x32xf32, #tpu.memory_space<vmem>>, %arg4: memref<1x8x32xf32, #tpu.memory_space<vmem>>) attributes {dimension_semantics = [#tpu.dimension_semantics<parallel>, #tpu.dimension_semantics<parallel>, #tpu.dimension_semantics<parallel>], iteration_bounds = array<i64: 2, 1, 1>, scalar_prefetch = 0 : i64, scratch_operands = 0 : i64, tpu.core_type = #tpu.core_type<tc>, window_params = [{transform_indices = @transform_0, window_bounds = array<i64: 1, 8, 32>}, {transform_indices = @transform_1, window_bounds = array<i64: 1, 8, 32>}]} {
    %c32_i32 = arith.constant 32 : i32
    %0 = arith.muli %arg2, %c32_i32 : i32
    %1 = tpu.iota {dimensions = array<i32: 1>} : vector<1x32xi32>
    %2 = vector.broadcast %0 : i32 to vector<1x32xi32>
    %3 = arith.addi %2, %1 : vector<1x32xi32>
    %c1_i32 = arith.constant 1 : i32
    %4 = vector.broadcast %c1_i32 : i32 to vector<1x32xi32>
    %5 = arith.andi %3, %4 : vector<1x32xi32>
    %6 = arith.subi %3, %5 : vector<1x32xi32>
    %7 = arith.sitofp %6 : vector<1x32xi32> to vector<1x32xf32>
    %cst = arith.constant -0.287823141 : f32
    %8 = vector.broadcast %cst : f32 to vector<1x32xf32>
    %9 = arith.mulf %7, %8 : vector<1x32xf32>
    %10 = math.exp %9 : vector<1x32xf32>
    %11 = arith.sitofp %5 : vector<1x32xi32> to vector<1x32xf32>
    %cst_0 = arith.constant 1.57079637 : f32
    %12 = vector.broadcast %cst_0 : f32 to vector<1x32xf32>
    %13 = arith.mulf %11, %12 : vector<1x32xf32>
    %c8_i32 = arith.constant 8 : i32
    %14 = arith.muli %arg1, %c8_i32 : i32
    %15 = tpu.iota {dimensions = array<i32: 0>} : vector<8x1xi32>
    %16 = vector.broadcast %14 : i32 to vector<8x1xi32>
    %17 = arith.addi %16, %15 : vector<8x1xi32>
    %18 = arith.sitofp %17 : vector<8x1xi32> to vector<8x1xf32>
    %19 = vector.broadcast %18 : vector<8x1xf32> to vector<8x32xf32>
    %20 = vector.broadcast %10 : vector<1x32xf32> to vector<8x32xf32>
    %21 = arith.mulf %19, %20 : vector<8x32xf32>
    %22 = vector.broadcast %13 : vector<1x32xf32> to vector<8x32xf32>
    %23 = arith.addf %21, %22 : vector<8x32xf32>
    %24 = math.sin %23 : vector<8x32xf32>
    %c0 = arith.constant 0 : index
    %c0_1 = arith.constant 0 : index
    %c0_2 = arith.constant 0 : index
    %25 = vector.load %arg3[%c0, %c0_1, %c0_2] : memref<1x8x32xf32, #tpu.memory_space<vmem>>, vector<1x8x32xf32>
    %26 = vector.shape_cast %25 : vector<1x8x32xf32> to vector<8x32xf32>
    %27 = arith.addf %26, %24 : vector<8x32xf32>
    %c0_3 = arith.constant 0 : index
    %c0_4 = arith.constant 0 : index
    %c0_5 = arith.constant 0 : index
    %28 = vector.load %arg4[%c0_3, %c0_4, %c0_5] : memref<1x8x32xf32, #tpu.memory_space<vmem>>, vector<1x8x32xf32>
    %29 = vector.shape_cast %28 : vector<1x8x32xf32> to vector<8x32xf32>
    %30 = vector.shape_cast %27 : vector<8x32xf32> to vector<1x8x32xf32>
    tpu.vector_store %arg4[%c0_3, %c0_4, %c0_5], %30 {strides = array<i32>} : memref<1x8x32xf32, #tpu.memory_space<vmem>>, vector<1x8x32xf32>,
    return
  }
  func.func @transform_0(%arg0: i32, %arg1: i32, %arg2: i32) -> (i32, i32, i32) {
    %c0_i32 = arith.constant 0 : i32
    return %arg0, %arg1, %arg2 : i32, i32, i32
  }
  func.func @transform_1(%arg0: i32, %arg1: i32, %arg2: i32) -> (i32, i32, i32) {
    %c0_i32 = arith.constant 0 : i32
    return %arg0, %arg1, %arg2 : i32, i32, i32
  }
}

</mosaic_0001>

<bundles_post_ra>
// kernel: tpu_custom_call.1
= control target key start
LH: loop header
LB: loop body
LE: loop exit
PB: predicated region body
PF: predicated region fallthrough
CT: control target
= control target key end

     0   :  { %6 = vsyncpa [#allocation3], 0  ;;  %s782_s0 = inlined_call_operand.hbm [shape: f32[2,8,32], index: 0, kind: input, shape index: {}]   ;;  %s783_s1 = inlined_call_operand.hbm [shape: f32[2,8,32], index: 1, kind: output, shape index: {}]  }
   0x1   :  { %8 = vsyncpa [#allocation3 + $0x1], 0 }
   0x2   :  { %9 = vsyncpa [#allocation4], 0 }
   0x3   :  { %11 = vsyncpa [#allocation4 + $0x1], 0  ;;  %s614_s6 = smov 0   ;;  %s616_s7 = smov 0  }
   0x4   :  { %s618_s8 = smov 0   ;;  %s620_s9 = smov 0  }
   0x5   :  { %s622_s10 = smov 0   ;;  %s624_s11 = smov 0  }
   0x6 LB: > { %s391_s12 = sadd.s32 4294967295, %s594_s11   ;;  %s392_s13 = sadd.s32 4294967294, %s594_s11   ;;  %s594_s11 = sphi %s624_s11, %s17_s11   ;;  %s590_s10 = sphi %s622_s10, %s795_s10   ;;  %s586_s9 = sphi %s620_s9, %s794_s9   ;;  %s582_s8 = sphi %s618_s8, %s793_s8   ;;  %s578_s7 = sphi %s616_s7, %s792_s7   ;;  %s574_s6 = sphi %s614_s6, %s791_s6  }
   0x7   : > { %s36_s14 = sadd.s32 1, %s590_s10  ;;  %s47_s15 = sadd.s32 1, %s582_s8 }
   0x8   : > { %p38_p0 = scmp.ge.s32.totalorder %s36_s14, 2  ;;  %p54_p1 = scmp.ne.s32.totalorder %s582_s8, %s578_s7 }
   0x9   : > { %p55_p2 = scmp.eq.s32.totalorder %s594_s11, 0  ;;  %p60_p3 = scmp.ne.s32.totalorder %s578_s7, %s574_s6 }
   0xa   : > { %s797_s14 = smov (%p38_p0, %s36_s14), 0  ;;  %p61_p5 = scmp.eq.s32.totalorder %s391_s12, 0 }
   0xb   : > { %p655_p4 = por %p55_p2, %p54_p1  ;;  %s40_s17 = ssub.s32 %s590_s10, %s797_s14 }
   0xc   : > { %p88_p6 = scmp.eq.s32.totalorder %s391_s12, 1  ;;  %p45_p7 = scmp.eq.s32.totalorder %s40_s17, 0 }
   0xd   : > { %p661_p8 = por %p61_p5, %p60_p3  ;;  %p94_p10 = scmp.eq.s32.totalorder %s392_s13, 1 }
   0xe   : > { %p665_p9 = por %p88_p6, %p54_p1  ;;  %p424_p13 = scmp.lt.s32.totalorder %s594_s11, 2 }
   0xf   : > { %s670_s20 = scalar_select %p45_p7, %s582_s8, %s47_s15  }
  0x10   : > { %p672_p11 = por %p94_p10, %p60_p3  ;;  %s114_s22 = sand.u32 1, %s582_s8  }
  0x11   : > { %s395_s23 = sshll.u32 %s114_s22, 3  ;;  %s396_s24 = sshll.u32 %s590_s10, 7 }
  0x12   : > { %s787_s21 = scalar_select %p672_p11, 1, 0 }
  0x13   : > { %s125_s27 = scalar_lea.hbm %s782_s0, %s396_s24  ;;  %s118_s28 = scalar_lea.vmem [#allocation2], %s395_s23 }
  0x14   : > { %s127_s29 = sshll.u32 %s118_s28, 4  ;;  %p685_p0 = pnand %p424_p13, %p655_p4  ;;  %s128_s29 = int_to_ptr.vmem [resolvable:$true] %s127_s29 }
  0x15   : > { %p397_p1 = scmp.ge.s32.totalorder %s594_s11, 1  ;;  %p132_p2 = scmp.lt.s32.totalorder %s594_s11, 3 }
  0x16   : > { %s115_s2 = scalar_lea.sflag [#allocation3], %s114_s22  ;;  %p488_p3 = pneg %p685_p0 }
  0x17   : > { %s499_s3 = scalar_lea.vmem %s128_s29, 128  ;;  %s596_s4 = smov [#allocation2]  }
  0x18   : > { %p500_p5 = scmp.ne.s32.totalorder %s128_s29, %s499_s3  ;;  %s504_s5 = sshll.u32 %s596_s4, 4  ;;  %s505_s5 = int_to_ptr.vmem [resolvable:$false] %s504_s5 }
  0x19   : > { %s506_s12 = scalar_lea.vmem %s505_s5, 256  ;;  %p507_p10 = scmp.lt.s32.totalorder %s128_s29, %s505_s5 }
  0x1a   : > { %p502_p6 = pnand %p500_p5, %p488_p3  ;;  %p508_p12 = scmp.lt.s32.totalorder %s506_s12, %s499_s3 }
  0x1c   : > { %p503_p7 = pneg %p502_p6  ;;  %p509_p4 = por %p508_p12, %p507_p10 }
  0x1e   : > { %p510_p13 = pnand %p509_p4, %p503_p7 }
  0x20   : > { %513 = shalt.err (!%p510_p13)
}
  0x21   : > { %419 = dma.hbm_to_vmem [thread:$0]  (!%p685_p0), %s125_s27, 128, %s128_s29, %s115_s2  }
  0x22   : > { %p133_p11 = pnand %p397_p1, %p132_p2 }
  0x23   : > { %s700_s13 = sand.u32 (!%p133_p11), 1, %s578_s7  }
  0x24   : > { %136 = sbr.rel (%p133_p11) target bundleno = 172 (0xac), region = 24  ;;  %s398_s15 = sshll.u32 (!%p133_p11), %s700_s13, 3 }
  0x25   : > { %s139_s16 = scalar_lea.sflag (!%p133_p11), [#allocation3], %s700_s13  ;;  %s706_s17 = scalar_lea.vmem (!%p133_p11), [#allocation2], %s398_s15 }
  0x29   : > { %565 = dma.done.wait (%p661_p8), %s139_s16, 128  }
  0x2a   : > { %567 = vsyncadd (%p661_p8), %s139_s16, 4294967168  ;;  %v162_v0 = vlaneseq  ;;  %v597_v25 = vmov 683565275   ;;  %v598_v27 = vmov 2475754826   ;;  %s160_s18 = scalar_lea.vmem [#allocation5], %s398_s15 }
  0x2b   : > { %v599_v29 = vmov 2131351028   ;;  %v600_v31 = vmov 2102212464   ;;  %v601_v33 = vmov 920167782  }
  0x2c   : > { %v163_v1 = vand.u32 127, %v162_v0  ;;  %v176_v7 = vshrl.u32 %v162_v0, 7  ;;  %v602_v40 = vmov 1326507024   ;;  %s306_s22 = sshll.u32 %s160_s18, 4  ;;  %s405_s23 = sshll.u32 %s586_s9, 7  ;;  %s737_s22 = int_to_ptr.vmem [resolvable:$true] %s306_s22 }
  0x2d   : > { %vm288_vm13 = vcmask 261120   ;;  %s304_s26 = scalar_lea.hbm %s783_s1, %s405_s23  ;;  %s291_s27 = scalar_lea.sflag [#allocation4], %s700_s13 }
  0x2e   : > { %v166_v2 = vand.u32 1, %v163_v1  ;;  %v179_v9 = vcvt.s32.f32 %v176_v7  ;;  %s514_s28 = scalar_lea.vmem %s737_s22, 128  ;;  %s603_s9 = smov [#allocation5]  }
  0x2f   : > { %p515_p8 = scmp.ne.s32.totalorder %s737_s22, %s514_s28  ;;  %s518_s29 = sshll.u32 %s603_s9, 4  ;;  %s519_s29 = int_to_ptr.vmem [resolvable:$false] %s518_s29 }
  0x30   : > { %v167_v3 = vsub.s32 %v163_v1, %v166_v2  ;;  %v172_v8 = vcvt.s32.f32 %v166_v2  ;;  %s520_s30 = scalar_lea.vmem %s519_s29, 256  ;;  %p521_p0 = scmp.lt.s32.totalorder %s737_s22, %s519_s29 }
  0x31   : > { %p516_p11 = pnand %p515_p8, %p665_p9  ;;  %p522_p1 = scmp.lt.s32.totalorder %s520_s30, %s514_s28 }
  0x32   : > { %v168_v4 = vcvt.s32.f32 %v167_v3  ;;  %v173_v10 = vmul.f32 1.5707964, %v172_v8 }
  0x33   : > { %p517_p12 = pneg %p516_p11  ;;  %p523_p2 = por %p522_p1, %p521_p0 }
  0x34   : > { %v169_v5 = vmul.f32 -0.28782314, %v168_v4 }
  0x35   : > { %p524_p3 = pnand %p523_p2, %p517_p12 }
  0x36   : > { %v170_v6 = vmul.f32 1.442695, %v169_v5 }
  0x38   : > { %480 = vpow2.f32 %v170_v6 }
  0x45   : > { %v481_v11 = vpop.eup %480 }
  0x46   : > { %v180_v12 = vmul.f32 %v481_v11, %v179_v9 }
  0x48   : > { %v712_v13 = vadd.f32 %v180_v12, %v173_v10 }
  0x4a   : > { %v185_v14 = vand.u32 2139095040, %v712_v13  ;;  %v182_v16 = vand.u32 2147483647, %v712_v13  ;;  %vm184_vm7 = vcmp.lt.s32.totalorder %v712_v13, 0  ;;  %vm274_vm12 = vweird.f32 %v712_v13 }
  0x4c   : > { %v186_v15 = vshrl.u32 %v185_v14, 23  ;;  %v189_v19 = vand.u32 8388607, %v182_v16  ;;  %vm183_vm8 = vcmp.le.f32.partialorder %v182_v16, 0.7853982 }
  0x4e   : > { %v400_v17 = vadd.s32 4294967169, %v186_v15  ;;  %v190_v22 = vor.u32 8388608, %v189_v19 }
  0x50   : > { %v192_v18 = vadd.s32 1, %v400_v17  ;;  %v230_v42 = vshll.u32 %v190_v22, 8 }
  0x52   : > { %vm193_vm0 = vcmp.gt.s32.totalorder %v192_v18, 0 }
  0x53   : > { %v194_v20 = vsel %vm193_vm0, %v192_v18, 0 }
  0x54   : > { %v196_v21 = vand.u32 31, %v194_v20  ;;  %v195_v23 = vshrl.u32 %v194_v20, 5 }
  0x56   : > { %v197_v24 = vsub.s32 32, %v196_v21  ;;  %v199_v26 = vshll.u32 %v597_v25, %v196_v21  ;;  %v202_v28 = vshll.u32 %v598_v27, %v196_v21  ;;  %v205_v30 = vshll.u32 %v599_v29, %v196_v21 }
  0x57   : > { %v208_v32 = vshll.u32 %v600_v31, %v196_v21  ;;  %v211_v34 = vshll.u32 %v601_v33, %v196_v21  ;;  %vm214_vm1 = vcmp.lt.s32.totalorder %v195_v23, 1  ;;  %vm217_vm2 = vcmp.lt.s32.totalorder %v195_v23, 4 }
  0x58   : > { %v198_v35 = vshrl.u32 %v597_v25, %v197_v24  ;;  %v200_v36 = vshrl.u32 %v598_v27, %v197_v24  ;;  %v203_v37 = vshrl.u32 %v599_v29, %v197_v24  ;;  %v206_v38 = vshrl.u32 %v600_v31, %v197_v24 }
  0x59   : > { %v209_v39 = vshrl.u32 %v601_v33, %v197_v24  ;;  %v212_v41 = vshrl.u32 %v602_v40, %v197_v24  ;;  %vm215_vm3 = vcmp.lt.s32.totalorder %v195_v23, 2  ;;  %vm216_vm4 = vcmp.lt.s32.totalorder %v195_v23, 3  ;;  %v286_v40 = vld [vmem:[%s706_s17] sm:$0xff] }
  0x5a   : > { %v201_v43 = vor.u32 %v200_v36, %v199_v26  ;;  %v204_v44 = vor.u32 %v203_v37, %v202_v28  ;;  %v207_v45 = vor.u32 %v206_v38, %v205_v30 }
  0x5b   : > { %v210_v46 = vor.u32 %v209_v39, %v208_v32  ;;  %v213_v47 = vor.u32 %v212_v41, %v211_v34 }
  0x5c   : > { %v218_v48 = vsel %vm214_vm1, %v198_v35, %v201_v43  ;;  %v219_v49 = vsel %vm217_vm2, %v207_v45, 2102212464  ;;  %v222_v50 = vsel %vm214_vm1, %v201_v43, %v204_v44  ;;  %v226_v51 = vsel %vm214_vm1, %v204_v44, %v207_v45 }
  0x5d   : > { %v220_v52 = vsel %vm216_vm4, %v204_v44, %v219_v49  ;;  %v223_v53 = vsel %vm217_vm2, %v210_v46, 920167782  ;;  %v227_v54 = vsel %vm217_vm2, %v213_v47, 1326507024 }
  0x5e   : > { %v224_v55 = vsel %vm216_vm4, %v207_v45, %v223_v53  ;;  %v228_v56 = vsel %vm216_vm4, %v210_v46, %v227_v54  ;;  %v221_v57 = vsel %vm215_vm3, %v218_v48, %v220_v52 }
  0x5f   : > { %v225_v58 = vsel %vm215_vm3, %v222_v50, %v224_v55  ;;  %v229_v59 = vsel %vm215_vm3, %v226_v51, %v228_v56  ;;  %v237_v0 = vmul.u32 %v230_v42, %v221_v57 }
  0x60   : > { %v718_v60 = vmul.u32.u64.low %v230_v42, %v229_v59  ;;  %v719_v61 = vmul.u32.u64.high %v230_v42, %v229_v59, %v718_v60  ;;  %v721_v62 = vmul.u32.u64.low %v230_v42, %v225_v58  ;;  %v722_v63 = vmul.u32.u64.high %v230_v42, %v225_v58, %v721_v62 }
  0x62   : > { %vm239_vm5 = vc.u32 %v719_v61, %v721_v62  ;;  %v240_v1 = vadd.s32 1, %v722_v63  ;;  %v238_v12 = vadd.s32 %v721_v62, %v719_v61 }
  0x64   : > { %v241_v2 = vsel %vm239_vm5, %v240_v1, %v722_v63 }
  0x65   : > { %v242_v3 = vadd.s32 %v241_v2, %v237_v0 }
  0x67   : > { %v243_v4 = vadd.s32 536870912, %v242_v3 }
  0x69   : > { %v244_v5 = vshrl.u32 %v243_v4, 30 }
  0x6b   : > { %v245_v6 = vshll.u32 %v244_v5, 30  ;;  %v268_v27 = vsub.s32 4, %v244_v5 }
  0x6d   : > { %v246_v7 = vsub.s32 %v242_v3, %v245_v6  ;;  %v269_v30 = vsel %vm184_vm7, %v268_v27, %v244_v5 }
  0x6e   : > { %v271_v32 = vsel %vm183_vm8, 0, %v269_v30 }
  0x6f   : > { %v248_v8 = vsub.s32 0, %v246_v7  ;;  %v275_v33 = vadd.s32 3, %v271_v32 }
  0x71   : > { %v401_v9 = vmin.u32 %v248_v8, %v246_v7  ;;  %v276_v34 = vand.u32 3, %v275_v33 }
  0x73   : > { %v250_v10 = vclz %v401_v9  ;;  %vm281_vm9 = vcmp.eq.s32.totalorder %v276_v34, 2  ;;  %vm278_vm10 = vcmp.eq.s32.totalorder %v276_v34, 0  ;;  %vm277_vm11 = vcmp.lt.s32.totalorder %v276_v34, 2 }
  0x75   : > { %v402_v11 = vadd.s32 4294967294, %v250_v10 }
  0x77   : > { %vm403_vm6 = vcmp.lt.s32.totalorder %v402_v11, 0 }
  0x78   : > { %v253_v14 = vsel %vm403_vm6, 0, %v402_v11 }
  0x79   : > { %v254_v15 = vsub.s32 32, %v253_v14  ;;  %v255_v17 = vshll.u32 %v246_v7, %v253_v14  ;;  %v258_v18 = vsub.s32 4294967266, %v253_v14 }
  0x7b   : > { %v256_v19 = vshrl.u32 %v238_v12, %v254_v15  ;;  %v259_v20 = vadd.s32 127, %v258_v18 }
  0x7d   : > { %v257_v21 = vor.u32 %v256_v19, %v255_v17  ;;  %v260_v22 = vshll.u32 %v259_v20, 23 }
  0x7f   : > { %v261_v23 = vor.u32 4788187, %v260_v22  ;;  %v264_v24 = vcvt.s32.f32 %v257_v21 }
  0x81   : > { %v262_v25 = vand.u32 2147483647, %v261_v23 }
  0x83   : > { %v265_v26 = vmul.f32 %v264_v24, %v262_v25 }
  0x85   : > { %v266_v28 = vxor.u32 2147483648, %v265_v26 }
  0x87   : > { %v267_v29 = vsel %vm184_vm7, %v266_v28, %v265_v26 }
  0x88   : > { %v270_v31 = vsel %vm183_vm8, %v712_v13, %v267_v29 }
  0x89   : > { %482 = vcosq.f32 %v270_v31 }
  0x8a   : > { %484 = vsinq.f32 %v270_v31 }
  0x96   : > { %v483_v35 = vpop.eup %482 }
  0x97   : > { %v485_v36 = vpop.eup %484  ;;  %v282_v37 = vxor.u32 2147483648, %v483_v35 }
  0x98   : > { %v279_v16 = vxor.u32 2147483648, %v485_v36 }
  0x99   : > { %v283_v38 = vsel %vm281_vm9, %v282_v37, %v485_v36 }
  0x9a   : > { %v280_v39 = vsel %vm278_vm10, %v483_v35, %v279_v16 }
  0x9b   : > { %v284_v41 = vsel %vm277_vm11, %v280_v39, %v283_v38 }
  0x9c   : > { %v285_v42 = vsel %vm274_vm12, nan, %v284_v41 }
  0x9d   : > { %v287_v43 = vadd.f32 %v286_v40, %v285_v42 }
  0x9f   : > { %289 = vst.msk [vmem:[%s160_s18] sm:$0xff] %vm288_vm13, %v287_v43 }
  0xa0   : > { %527 = shalt.err (!%p524_p3)
}
  0xa1   : > { %s528_s2 = scalar_lea.hbm %s304_s26, 128  ;;  %s532_s5 = scalar_lea.hbm %s783_s1, 256 }
  0xa2   : > { %p529_p5 = scmp.ne.s32.totalorder %s304_s26, %s528_s2  ;;  %p533_p10 = scmp.lt.s32.totalorder %s304_s26, %s783_s1 }
  0xa3   : > { %p534_p4 = scmp.lt.s32.totalorder %s532_s5, %s528_s2 }
  0xa4   : > { %p530_p6 = pnand %p529_p5, %p665_p9 }
  0xa5   : > { %p535_p13 = por %p534_p4, %p533_p10 }
  0xa6   : > { %p531_p7 = pneg %p530_p6 }
  0xa8   : > { %p536_p8 = pnand %p535_p13, %p531_p7 }
  0xaa   : > { %539 = shalt.err (!%p536_p8)
}
  0xab   : > { %414 = dma.vmem_to_hbm [thread:$0]  (%p665_p9), %s737_s22, 128, %s304_s26, %s291_s27  }
  0xac PF: > { %s318_s15 = sand.u32 1, %s574_s6   ;;  %p789_p11 = scmp.ne.s32.totalorder %s787_s21, 0 }
  0xad   : > { %p790_p12 = scmp.ge.s32.totalorder %s594_s11, 2  ;;  %s319_s16 = scalar_lea.sflag [#allocation4], %s318_s15 }
  0xaf   : > { %p421_p0 = pnand %p790_p12, %p789_p11 }
  0xb1   : > { %p422_p1 = pneg %p421_p0 }
  0xb3   : > { %569 = dma.done.wait (%p422_p1), %s319_s16, 128  }
  0xb4   : > { %571 = vsyncadd (%p422_p1), %s319_s16, 4294967168  ;;  %s17_s11 = sadd.s32 1, %s594_s11   ;;  %s791_s6 = smov %s578_s7 }
  0xb5   : > { %p14_p2 = scmp.ge.s32.totalorder %s17_s11, 4   ;;  %s792_s7 = smov %s582_s8 }
  0xb6   : > { %s793_s8 = smov %s670_s20  ;;  %s794_s9 = smov %s590_s10 }
  0xb7   : > { %s795_s10 = smov %s797_s14  ;;  %16 = sbr.rel (!%p14_p2) target bundleno = 6 (0x6), region = 69 }
  0xbc   :  { %324 = vsyncpa [#allocation3], 1 }
  0xbd   :  { %326 = vsyncpa [#allocation3 + $0x1], 1 }
  0xbe   :  { %327 = vsyncpa [#allocation4], 1 }
  0xbf   :  { %329 = vsyncpa [#allocation4 + $0x1], 1 }

</bundles_post_ra>
